<compile_context>
chip_gen: v7x
topology: tpu7x:2x2x1
jax: 0.10.0
libtpu: 0.0.40
codegen_flags: <defaults>
</compile_context>

<pallas_src>
import functools

import numpy as np
import jax
import jax.numpy as jnp
from jax.experimental import pallas as pl
from jax.experimental.pallas import tpu as pltpu


@functools.lru_cache(maxsize=None)
def _interp_matrix(n_out: int, n_in: int) -> np.ndarray:
    """torch.nn.Upsample(mode='bilinear', scale_factor=2, align_corners=False)
    as a dense (n_out, n_in) matrix: half-pixel source centers, edges clamped.
    All entries are dyadic fractions {0, 0.25, 0.75, 1} -> exact in bfloat16.
    (Validated against the known PyTorch result in __main__.)"""
    src = (np.arange(n_out, dtype=np.float64) + 0.5) / 2.0 - 0.5
    src = np.maximum(src, 0.0)
    i0 = np.minimum(np.floor(src).astype(np.int64), n_in - 1)
    lam = src - i0
    i1 = np.minimum(i0 + 1, n_in - 1)
    m = np.zeros((n_out, n_in), dtype=np.float64)
    np.add.at(m, (np.arange(n_out), i0), 1.0 - lam)
    np.add.at(m, (np.arange(n_out), i1), lam)
    return m.astype(np.float32)


def _pick_channel_tile(m: int, h_in: int, w_in: int, h_out: int, w_out: int,
                       out_itemsize: int) -> int:
    """Largest divisor of m whose (double-buffered) block stays under ~2 MiB,
    preferring >= 4 grid steps (2 per v7x TensorCore) whenever m allows."""
    per_ch = (2 * (h_in * w_in * 2 + h_out * w_out * out_itemsize)  # dbl-buffered I/O
              + h_out * w_in * 8)                                   # f32+bf16 intermediate
    cap = 2 * 1024 * 1024
    best = 1
    for t in range(1, m + 1):
        if m % t != 0 or t * per_ch > cap:
            continue
        if m // t >= min(4, m):
            best = t
    return best


def _upsample_kernel(z_ref, r_ref, ct_ref, o_ref):
    # z_ref : (MC, H_in,  W_in )  bf16  conv-transformed channel tile
    # r_ref : (H_out, H_in)       bf16  row-interp matrix (VMEM resident)
    # ct_ref: (W_in,  W_out)      bf16  col-interp matrix transposed (resident)
    # o_ref : (MC, H_out, W_out)  caller dtype
    mc, h_in, w_in = z_ref.shape
    h_out = r_ref.shape[0]
    w_out = ct_ref.shape[1]

    # Row interpolation: per-channel R @ z  (canonical batched matmul over MC).
    rb = jnp.broadcast_to(r_ref[...][None, :, :], (mc, h_out, h_in))
    t = jnp.einsum('coh,chw->cow', rb, z_ref[...],
                   preferred_element_type=jnp.float32)          # (MC, H_out, W_in)

    # Column interpolation: per-channel t @ C^T, bf16 MXU operands, f32 accum.
    cb = jnp.broadcast_to(ct_ref[...][None, :, :], (mc, w_in, w_out))
    y = jnp.einsum('cow,cwv->cov', t.astype(jnp.bfloat16), cb,
                   preferred_element_type=jnp.float32)          # (MC, H_out, W_out)

    o_ref[...] = y.astype(o_ref.dtype)                          # store in final dtype


def _upblock_impl(x, conv_w, conv_b):
    """x: (N, C_in, H, W); conv_w: (C_out, C_in, 1, 1); conv_b: (C_out,)."""
    n, c_in, h_in, w_in = x.shape
    c_out = conv_w.shape[0]
    h_out, w_out = 2 * h_in, 2 * w_in
    m = n * c_out

    # 1x1 conv + bias on the pre-upsample tensor (tiny XLA GEMM, f32).
    # Exact reordering: the upsample is linear & per-channel, and each interp
    # row sums to 1, so conv and bias commute with it.
    w2 = conv_w.reshape(c_out, c_in).astype(x.dtype)
    z = jnp.einsum('kc,nchw->nkhw', w2, x) + conv_b.astype(x.dtype)[None, :, None, None]
    z = z.reshape(m, h_in, w_in).astype(jnp.bfloat16)           # free reshape; bf16 MXU operand

    # Small interpolation constants (exact in bf16), cached host-side.
    r = jnp.asarray(_interp_matrix(h_out, h_in), dtype=jnp.bfloat16)      # (H_out, H_in)
    ct = jnp.asarray(_interp_matrix(w_out, w_in).T, dtype=jnp.bfloat16)   # (W_in,  W_out)

    mc = _pick_channel_tile(m, h_in, w_in, h_out, w_out, x.dtype.itemsize)
    grid = (m // mc,)

    out = pl.pallas_call(
        _upsample_kernel,
        out_shape=jax.ShapeDtypeStruct((m, h_out, w_out), x.dtype),
        grid_spec=pltpu.PrefetchScalarGridSpec(
            num_scalar_prefetch=0,
            grid=grid,
            in_specs=[
                pl.BlockSpec((mc, h_in, w_in), lambda i: (i, 0, 0)),   # channel tile
                pl.BlockSpec((h_out, h_in), lambda i: (0, 0)),         # resident R
                pl.BlockSpec((w_in, w_out), lambda i: (0, 0)),         # resident C^T
            ],
            out_specs=pl.BlockSpec((mc, h_out, w_out), lambda i: (i, 0, 0)),
        ),
        compiler_params=pltpu.CompilerParams(
            dimension_semantics=("parallel",),
            vmem_limit_bytes=32 * 1024 * 1024),
    )(z, r, ct)

    # (N*C_out, H_out, W_out) -> (N, C_out, H_out, W_out): pure reshape.
    return out.reshape(n, c_out, h_out, w_out)


upblock_forward = jax.jit(_upblock_impl)


def upblock_ref(x, conv_w, conv_b):
    """Pure-JAX f32 reference in the module's order: upsample then 1x1 conv."""
    n, c_in, h_in, w_in = x.shape
    c_out = conv_w.shape[0]
    r = jnp.asarray(_interp_matrix(2 * h_in, h_in))
    c = jnp.asarray(_interp_matrix(2 * w_in, w_in))
    up = jnp.einsum('oh,nchw,vw->ncov', r, x, c)
    y = jnp.einsum('kc,ncov->nkov', conv_w.reshape(c_out, c_in), up)
    return y + conv_b[None, :, None, None]


if __name__ == "__main__":
    # Sanity: interp matrix matches PyTorch bilinear(align_corners=False, x2)
    # for the known 2 -> 4 case: [a, .75a+.25b, .25a+.75b, b].
    expected = np.array([[1.0, 0.0], [0.75, 0.25], [0.25, 0.75], [0.0, 1.0]], np.float32)
    assert np.allclose(_interp_matrix(4, 2), expected), _interp_matrix(4, 2)

    key = jax.random.PRNGKey(0)
    k_x, k_w, k_b = jax.random.split(key, 3)

    N, C_IN, C_OUT, H, W = 2, 4, 8, 16, 16
    x = jax.random.normal(k_x, (N, C_IN, H, W), dtype=jnp.float32)
    # Deterministic synthetic Conv2d(in_ch, out_ch, kernel_size=1) parameters.
    conv_w = jax.random.normal(k_w, (C_OUT, C_IN, 1, 1), dtype=jnp.float32) * 0.1
    conv_b = jax.random.normal(k_b, (C_OUT,), dtype=jnp.float32) * 0.1

    out = jax.block_until_ready(upblock_forward(x, conv_w, conv_b))
    ref = upblock_ref(x, conv_w, conv_b)

    assert out.shape == (N, C_OUT, 2 * H, 2 * W), out.shape
    # bf16 MXU operands vs f32 reference -> loosened tolerance.
    max_err = float(jnp.max(jnp.abs(out - ref)))
    assert max_err < 5e-2, max_err

    print("KERNEL_OK")
</pallas_src>

<mosaic_0001>
module attributes {stable_mosaic.version = 11 : i64} {
  func.func @_upsample_kernel(%arg0: i32, %arg1: memref<4x16x16xbf16, #tpu.memory_space<vmem>>, %arg2: memref<32x16xbf16, #tpu.memory_space<vmem>>, %arg3: memref<16x32xbf16, #tpu.memory_space<vmem>>, %arg4: memref<4x32x32xf32, #tpu.memory_space<vmem>>) attributes {dimension_semantics = [#tpu.dimension_semantics<parallel>], iteration_bounds = array<i64: 4>, scalar_prefetch = 0 : i64, scratch_operands = 0 : i64, tpu.core_type = #tpu.core_type<tc>, window_params = [{transform_indices = @transform_0, window_bounds = array<i64: 4, 16, 16>}, {pipeline_mode = #tpu.pipeline_mode<synchronous>, transform_indices = @transform_1, window_bounds = array<i64: 32, 16>}, {pipeline_mode = #tpu.pipeline_mode<synchronous>, transform_indices = @transform_2, window_bounds = array<i64: 16, 32>}, {transform_indices = @transform_3, window_bounds = array<i64: 4, 32, 32>}]} {
    %c0 = arith.constant 0 : index
    %c0_0 = arith.constant 0 : index
    %0 = vector.load %arg2[%c0, %c0_0] : memref<32x16xbf16, #tpu.memory_space<vmem>>, vector<32x16xbf16>
    %1 = vector.shape_cast %0 : vector<32x16xbf16> to vector<1x32x16xbf16>
    %2 = vector.shape_cast %1 : vector<1x32x16xbf16> to vector<1x32x16xbf16>
    %3 = vector.broadcast %2 : vector<1x32x16xbf16> to vector<4x32x16xbf16>
    %c0_1 = arith.constant 0 : index
    %c0_2 = arith.constant 0 : index
    %c0_3 = arith.constant 0 : index
    %4 = vector.load %arg1[%c0_1, %c0_2, %c0_3] : memref<4x16x16xbf16, #tpu.memory_space<vmem>>, vector<4x16x16xbf16>
    "tpu.trace_start"() <{level = 10 : i32, message = "coh,chw->cow"}> : () -> ()
    %cst = arith.constant dense<0.000000e+00> : vector<4x32x16xf32>
    %5 = tpu.matmul %3, %4, %cst {dimension_numbers = #tpu.dot_dimension_numbers<[2], [1], [1], [2], [0, 0, 0, 1, 1, 2], [0], [0]>} : vector<4x32x16xbf16>, vector<4x16x16xbf16>, vector<4x32x16xf32> -> vector<4x32x16xf32>
    "tpu.trace_stop"() : () -> ()
    %c0_4 = arith.constant 0 : index
    %c0_5 = arith.constant 0 : index
    %6 = vector.load %arg3[%c0_4, %c0_5] : memref<16x32xbf16, #tpu.memory_space<vmem>>, vector<16x32xbf16>
    %7 = vector.shape_cast %6 : vector<16x32xbf16> to vector<1x16x32xbf16>
    %8 = vector.shape_cast %7 : vector<1x16x32xbf16> to vector<1x16x32xbf16>
    %9 = vector.broadcast %8 : vector<1x16x32xbf16> to vector<4x16x32xbf16>
    %10 = arith.truncf %5 : vector<4x32x16xf32> to vector<4x32x16xbf16>
    "tpu.trace_start"() <{level = 10 : i32, message = "cow,cwv->cov"}> : () -> ()
    %cst_6 = arith.constant dense<0.000000e+00> : vector<4x32x32xf32>
    %11 = tpu.matmul %10, %9, %cst_6 {dimension_numbers = #tpu.dot_dimension_numbers<[2], [1], [1], [2], [0, 0, 0, 1, 1, 2], [0], [0]>} : vector<4x32x16xbf16>, vector<4x16x32xbf16>, vector<4x32x32xf32> -> vector<4x32x32xf32>
    "tpu.trace_stop"() : () -> ()
    %c0_7 = arith.constant 0 : index
    %c0_8 = arith.constant 0 : index
    %c0_9 = arith.constant 0 : index
    %12 = vector.load %arg4[%c0_7, %c0_8, %c0_9] : memref<4x32x32xf32, #tpu.memory_space<vmem>>, vector<4x32x32xf32>
    tpu.vector_store %arg4[%c0_7, %c0_8, %c0_9], %11 {strides = array<i32>} : memref<4x32x32xf32, #tpu.memory_space<vmem>>, vector<4x32x32xf32>,
    return
  }
  func.func @transform_0(%arg0: i32) -> (i32, i32, i32) {
    %c0_i32 = arith.constant 0 : i32
    %c0_i32_0 = arith.constant 0 : i32
    %c0_i32_1 = arith.constant 0 : i32
    return %arg0, %c0_i32, %c0_i32_0 : i32, i32, i32
  }
  func.func @transform_1(%arg0: i32) -> (i32, i32) {
    %c0_i32 = arith.constant 0 : i32
    %c0_i32_0 = arith.constant 0 : i32
    %c0_i32_1 = arith.constant 0 : i32
    return %c0_i32, %c0_i32_0 : i32, i32
  }
  func.func @transform_2(%arg0: i32) -> (i32, i32) {
    %c0_i32 = arith.constant 0 : i32
    %c0_i32_0 = arith.constant 0 : i32
    %c0_i32_1 = arith.constant 0 : i32
    return %c0_i32, %c0_i32_0 : i32, i32
  }
  func.func @transform_3(%arg0: i32) -> (i32, i32, i32) {
    %c0_i32 = arith.constant 0 : i32
    %c0_i32_0 = arith.constant 0 : i32
    %c0_i32_1 = arith.constant 0 : i32
    return %arg0, %c0_i32, %c0_i32_0 : i32, i32, i32
  }
}

</mosaic_0001>

<bundles_post_ra>
// kernel: _upblock_impl.1
= control target key start
LH: loop header
LB: loop body
LE: loop exit
PB: predicated region body
PF: predicated region fallthrough
CT: control target
= control target key end

     0   :  { %8 = vsyncpa [#allocation3], 0  ;;  %s1168_s0 = inlined_call_operand.vmem [shape: bf16[16,16,16], index: 0, kind: input, shape index: {}]   ;;  %s1169_s1 = inlined_call_operand.vmem [shape: bf16[32,16], index: 1, kind: input, shape index: {}]   ;;  %s1170_s2 = inlined_call_operand.vmem [shape: bf16[16,32], index: 2, kind: input, shape index: {}]   ;;  %s1171_s3 = inlined_call_operand.hbm [shape: f32[16,32,32], index: 3, kind: output, shape index: {}]  }
   0x1   :  { %10 = vsyncpa [#allocation3 + $0x1], 0  ;;  %s1002_s12 = smov 0   ;;  %s1004_s13 = smov 0  }
   0x2   :  { %s1006_s14 = smov 0   ;;  %s1008_s15 = smov 0  }
   0x3 LB: > { %s1023_s16 = sadd.s32 4294967295, %s977_s15   ;;  %s755_s17 = sadd.s32 4294967294, %s977_s15   ;;  %s977_s15 = sphi %s1008_s15, %s1177_s15   ;;  %s973_s14 = sphi %s1006_s14, %s1176_s14   ;;  %s969_s13 = sphi %s1004_s13, %s1175_s13   ;;  %s965_s12 = sphi %s1002_s12, %s1174_s12  }
   0x4   : > { %s1027_s18 = sadd.s32 1, %s977_s15   ;;  %s91_s19 = sadd.s32 1, %s973_s14 }
   0x5   : > { %s88_s20 = ssub.s32 %s977_s15, %s1027_s18  ;;  %p101_p0 = scmp.ne.s32.totalorder %s973_s14, %s969_s13 }
   0x6   : > { %p89_p1 = scmp.eq.s32.totalorder %s88_s20, 0  ;;  %p102_p2 = scmp.eq.s32.totalorder %s1023_s16, 3 }
   0x7   : > { %p107_p3 = scmp.ne.s32.totalorder %s969_s13, %s965_s12  ;;  %p108_p4 = scmp.eq.s32.totalorder %s755_s17, 3 }
   0x8   : > { %s1038_s21 = scalar_select %p89_p1, %s973_s14, %s91_s19  }
   0x9   : > { %p1040_p5 = por %p102_p2, %p101_p0  ;;  %p1044_p6 = por %p108_p4, %p107_p3 }
   0xa   : > { %p758_p7 = scmp.ge.s32.totalorder %s977_s15, 1  ;;  %p142_p8 = scmp.lt.s32.totalorder %s977_s15, 5 }
   0xc   : > { %p143_p9 = pnand %p758_p7, %p142_p8 }
   0xd   : > { %s760_s24 = sshll.u32 (!%p143_p9), %s1023_s16, 2  ;;  %v910_v0 = vld [vmem:[%s1169_s1] sm:$0xff] (!%p143_p9)   ;;  %vm204_vm0 = vcmask (!%p143_p9), 130048   ;;  %v911_v2 = vld [vmem:[%s1169_s1 + $0x8] sm:$0xff] (!%p143_p9)   ;;  %s164_s8 = sand.u32 (!%p143_p9), 1, %s969_s13   ;;  %vm661_vm1 = vcmask (!%p143_p9), 261120  }
   0xe   : > { %146 = sbr.rel (%p143_p9) target bundleno = 485 (0x1e5), region = 32  ;;  %p168_p10 = scmp.lt.s32.totalorder (!%p143_p9), %s760_s24, 15  ;;  %821 = vmatprep.mubr.msk.bf16.mxu0 (!%p143_p9), %vm204_vm0, %v910_v0  ;;  %827 = vmatprep.mubr.msk.bf16.mxu1 (!%p143_p9), %vm204_vm0, %v910_v0  ;;  %v914_v6 = vld [vmem:[%s1170_s2] sm:$0xff] (!%p143_p9)  }
   0xf   : > { %s759_s9 = sshll.u32 (!%p143_p9), %s164_s8, 7  ;;  %s794_s11 = sshll.u32 (!%p143_p9), %s1023_s16, 11 }
  0x10   : > { %s1082_s10 = scalar_lea.vmem (!%p143_p9), [#allocation2], %s759_s9  ;;  %s1111_s16 = scalar_lea.hbm (!%p143_p9), %s1171_s3, %s794_s11 }
  0x11   : > { %s693_s17 = sshll.u32 (!%p143_p9), %s1082_s10, 4  ;;  %s979_s26 = smov (!%p143_p9), [#allocation2]   ;;  %s1113_s17 = int_to_ptr.vmem [resolvable:$true] %s693_s17 }
  0x12   : > { %s915_s25 = scalar_lea.vmem (!%p143_p9), %s1113_s17, 2048 }
  0x13   : > { %p916_p11 = scmp.ne.s32.totalorder (!%p143_p9), %s1113_s17, %s915_s25 }
  0x15   : > { %s1179_s24 = smov (!%p168_p10, %s760_s24), 15  ;;  %p917_p12 = pnand %p916_p11, %p1040_p5 }
  0x16   : > { %s792_s27 = sshll.u32 %s1179_s24, 3  ;;  %s1127_s24 = scalar_lea.sflag [#allocation3], %s164_s8 }
  0x17   : > { %s172_s30 = scalar_lea.vmem %s1168_s0, %s792_s27  ;;  %p918_p13 = pneg %p917_p12 }
  0x18   : > { %v908_v1 = vld [vmem:[%s172_s30] sm:$0xff]   ;;  %v909_v3 = vld [vmem:[%s172_s30 + $0x8] sm:$0xff]   ;;  %v912_v4 = vld [vmem:[%s172_s30 + $0x10] sm:$0xff]   ;;  %s919_s27 = sshll.u32 %s979_s26, 4  ;;  %s920_s27 = int_to_ptr.vmem [resolvable:$false] %s919_s27 }
  0x19   : > { %819 = vmatprep.subr.bf16.mxu0 %v908_v1  ;;  %825 = vmatprep.subr.bf16.mxu1 %v909_v3  ;;  %v913_v5 = vld [vmem:[%s172_s30 + $0x18] sm:$0xff]   ;;  %s921_s28 = scalar_lea.vmem %s920_s27, 4096  ;;  %p922_p0 = scmp.lt.s32.totalorder %s1113_s17, %s920_s27 }
  0x1a   : > { %820 = vmatpush3.bf16.msra.mxu0 %v908_v1  ;;  %826 = vmatpush3.bf16.msra.mxu1 %v909_v3  ;;  %p923_p1 = scmp.lt.s32.totalorder %s921_s28, %s915_s25 }
  0x1b   : > { %831 = vmatprep.subr.bf16.mxu0 %v912_v4  ;;  %837 = vmatprep.subr.bf16.mxu1 %v913_v5 }
  0x1c   : > { %p924_p2 = por %p923_p1, %p922_p0 }
  0x1d   : > { %822 = vmatmul.mubr.msk.bf16.vlgmr.msra.gmra.mrb[0].mxu0 %vm204_vm0, %v911_v2  ;;  %828 = vmatmul.mubr.msk.bf16.vlgmr.msra.gmra.mrb[0].mxu1 %vm204_vm0, %v911_v2 }
  0x1e   : > { %832 = vmatpush3.bf16.msra.mxu0 %v912_v4  ;;  %838 = vmatpush3.bf16.msra.mxu1 %v913_v5  ;;  %p925_p3 = pnand %p924_p2, %p918_p13 }
  0x1f   : > { %833 = vmatprep.mubr.msk.bf16.mxu0 %vm204_vm0, %v910_v0  ;;  %839 = vmatprep.mubr.msk.bf16.mxu1 %vm204_vm0, %v910_v0 }
  0x20   : > { %843 = vmatprep.subr.bf16.mxu0 %v914_v6  ;;  %849 = vmatprep.subr.bf16.mxu1 %v914_v6 }
  0x25   : > { %834 = vmatmul.mubr.msk.bf16.vlgmr.msra.gmra.mrb[4].mxu0 %vm204_vm0, %v911_v2  ;;  %840 = vmatmul.mubr.msk.bf16.vlgmr.msra.gmra.mrb[4].mxu1 %vm204_vm0, %v911_v2 }
  0x26   : > { %844 = vmatpush3.bf16.msra.mxu0 %v914_v6  ;;  %850 = vmatpush3.bf16.msra.mxu1 %v914_v6 }
  0x27   : > { %855 = vmatprep.subr.bf16.mxu0 %v914_v6  ;;  %861 = vmatprep.subr.bf16.mxu1 %v914_v6 }
  0xf0   : > { %v823_v7 = vpop.f32.mrb[0].mxu0  ;;  %v829_v8 = vpop.f32.mrb[0].mxu1 }
  0xf1   : > { %v245_v9 = vpop.f32.mrb[1].mxu0  ;;  %v300_v10 = vpop.f32.mrb[1].mxu1 }
  0xf2   : > { %v824_v11 = vpop.f32.mrb[2].mxu0  ;;  %v830_v13 = vpop.f32.mrb[2].mxu1 }
  0xf3   : > { %v428_v12 = vpack.c.bf16 %v824_v11, %v823_v7  ;;  %v248_v14 = vpop.f32.mrb[3].mxu0  ;;  %v430_v15 = vpack.c.bf16 %v830_v13, %v829_v8  ;;  %v303_v17 = vpop.f32.mrb[3].mxu1 }
  0xf4   : > { %v427_v16 = vpack.c.bf16 %v248_v14, %v245_v9  ;;  %v429_v18 = vpack.c.bf16 %v303_v17, %v300_v10 }
  0xf6   : > { %845 = vmatprep.mubr.msk.bf16.mxu0 %vm204_vm0, %v427_v16  ;;  %851 = vmatprep.mubr.msk.bf16.mxu1 %vm204_vm0, %v429_v18 }
  0xf7   : > { %846 = vmatmul.mubr.msk.bf16.vlgmr.msra.gmra.mrb[8].mxu0 %vm204_vm0, %v428_v12  ;;  %852 = vmatmul.mubr.msk.bf16.vlgmr.msra.gmra.mrb[8].mxu1 %vm204_vm0, %v430_v15 }
  0xf8   : > { %v835_v19 = vpop.f32.mrb[4].mxu0  ;;  %856 = vmatpush3.bf16.msra.mxu0 %v914_v6  ;;  %v841_v20 = vpop.f32.mrb[4].mxu1  ;;  %862 = vmatpush3.bf16.msra.mxu1 %v914_v6 }
  0xf9   : > { %v355_v21 = vpop.f32.mrb[5].mxu0  ;;  %v410_v22 = vpop.f32.mrb[5].mxu1 }
  0xfa   : > { %v836_v23 = vpop.f32.mrb[6].mxu0  ;;  %v842_v25 = vpop.f32.mrb[6].mxu1 }
  0xfb   : > { %v432_v24 = vpack.c.bf16 %v836_v23, %v835_v19  ;;  %v358_v26 = vpop.f32.mrb[7].mxu0  ;;  %v434_v27 = vpack.c.bf16 %v842_v25, %v841_v20  ;;  %v413_v29 = vpop.f32.mrb[7].mxu1 }
  0xfc   : > { %v431_v28 = vpack.c.bf16 %v358_v26, %v355_v21  ;;  %v433_v30 = vpack.c.bf16 %v413_v29, %v410_v22 }
  0xfe   : > { %857 = vmatprep.mubr.msk.bf16.mxu0 %vm204_vm0, %v431_v28  ;;  %863 = vmatprep.mubr.msk.bf16.mxu1 %vm204_vm0, %v433_v30 }
  0xff   : > { %858 = vmatmul.mubr.msk.bf16.vlgmr.msra.gmra.mrb[12].mxu0 %vm204_vm0, %v432_v24  ;;  %864 = vmatmul.mubr.msk.bf16.vlgmr.msra.gmra.mrb[12].mxu1 %vm204_vm0, %v434_v27 }
 0x1ca   : > { %v847_v31 = vpop.f32.mrb[8].mxu0  ;;  %v853_v32 = vpop.f32.mrb[8].mxu1 }
 0x1cb   : > { %664 = vst.msk [vmem:[%s1082_s10 + $0x10] sm:$0xff] %vm661_vm1, %v847_v31  ;;  %v481_v33 = vpop.f32.mrb[9].mxu0  ;;  %668 = vst.msk [vmem:[%s1082_s10 + $0x30] sm:$0xff] %vm661_vm1, %v853_v32  ;;  %v536_v34 = vpop.f32.mrb[9].mxu1 }
 0x1cc   : > { %662 = vst.msk [vmem:[%s1082_s10] sm:$0xff] %vm661_vm1, %v481_v33  ;;  %v848_v35 = vpop.f32.mrb[10].mxu0  ;;  %666 = vst.msk [vmem:[%s1082_s10 + $0x20] sm:$0xff] %vm661_vm1, %v536_v34  ;;  %v854_v36 = vpop.f32.mrb[10].mxu1 }
 0x1cd   : > { %665 = vst.msk [vmem:[%s1082_s10 + $0x18] sm:$0xff] %vm661_vm1, %v848_v35  ;;  %v484_v37 = vpop.f32.mrb[11].mxu0  ;;  %669 = vst.msk [vmem:[%s1082_s10 + $0x38] sm:$0xff] %vm661_vm1, %v854_v36  ;;  %v539_v38 = vpop.f32.mrb[11].mxu1 }
 0x1ce   : > { %663 = vst.msk [vmem:[%s1082_s10 + $0x8] sm:$0xff] %vm661_vm1, %v484_v37  ;;  %667 = vst.msk [vmem:[%s1082_s10 + $0x28] sm:$0xff] %vm661_vm1, %v539_v38 }
 0x1d2   : > { %v859_v39 = vpop.f32.mrb[12].mxu0  ;;  %v865_v40 = vpop.f32.mrb[12].mxu1 }
 0x1d3   : > { %672 = vst.msk [vmem:[%s1082_s10 + $0x50] sm:$0xff] %vm661_vm1, %v859_v39  ;;  %v591_v41 = vpop.f32.mrb[13].mxu0  ;;  %676 = vst.msk [vmem:[%s1082_s10 + $0x70] sm:$0xff] %vm661_vm1, %v865_v40  ;;  %v646_v42 = vpop.f32.mrb[13].mxu1 }
 0x1d4   : > { %670 = vst.msk [vmem:[%s1082_s10 + $0x40] sm:$0xff] %vm661_vm1, %v591_v41  ;;  %v860_v43 = vpop.f32.mrb[14].mxu0  ;;  %674 = vst.msk [vmem:[%s1082_s10 + $0x60] sm:$0xff] %vm661_vm1, %v646_v42  ;;  %v866_v44 = vpop.f32.mrb[14].mxu1 }
 0x1d5   : > { %673 = vst.msk [vmem:[%s1082_s10 + $0x58] sm:$0xff] %vm661_vm1, %v860_v43  ;;  %v594_v45 = vpop.f32.mrb[15].mxu0  ;;  %677 = vst.msk [vmem:[%s1082_s10 + $0x78] sm:$0xff] %vm661_vm1, %v866_v44  ;;  %v649_v46 = vpop.f32.mrb[15].mxu1 }
 0x1d6   : > { %671 = vst.msk [vmem:[%s1082_s10 + $0x48] sm:$0xff] %vm661_vm1, %v594_v45  ;;  %675 = vst.msk [vmem:[%s1082_s10 + $0x68] sm:$0xff] %vm661_vm1, %v649_v46 }
 0x1d7   : > { %928 = shalt.err (!%p925_p3)
}
 0x1d8   : > { %s929_s29 = scalar_lea.hbm %s1111_s16, 2048  ;;  %s933_s5 = scalar_lea.hbm %s1171_s3, 8192 }
 0x1d9   : > { %p930_p4 = scmp.ne.s32.totalorder %s1111_s16, %s929_s29  ;;  %p934_p9 = scmp.lt.u32.totalorder %s1111_s16, %s1171_s3 }
 0x1da   : > { %p935_p10 = scmp.lt.u32.totalorder %s933_s5, %s929_s29  ;;  %p937_p12 = scmp.lt.u32.totalorder %s929_s29, %s1111_s16 }
 0x1db   : > { %p931_p7 = pnand %p930_p4, %p1040_p5 }
 0x1dc   : > { %p936_p11 = por %p935_p10, %p934_p9 }
 0x1dd   : > { %p932_p8 = pneg %p931_p7 }
 0x1de   : > { %p938_p13 = por %p937_p12, %p936_p11 }
 0x1e0   : > { %p939_p0 = pnand %p938_p13, %p932_p8 }
 0x1e2   : > { %942 = shalt.err (!%p939_p0)
}
 0x1e3   : > { %s980_s8 = smov 128   ;;  %s981_s9 = smov 8  }
 0x1e4   : > { %867 = dma.vmem_to_hbm [thread:$0]  (%p1040_p5), %s1113_s17, 2048, %s1111_s16, %s1127_s24, %s980_s8, %s980_s8, %s981_s9  }
 0x1e5 PF: > { %p873_p1 = scmp.ge.s32.totalorder %s977_s15, 2  ;;  %s708_s10 = sand.u32 1, %s965_s12  }
 0x1e6   : > { %s709_s11 = scalar_lea.sflag [#allocation3], %s708_s10 }
 0x1e7   : > { %p870_p2 = pnand %p873_p1, %p1044_p6 }
 0x1e9   : > { %960 = dma.done.wait (!%p870_p2), %s709_s11, 2048  }
 0x1ea   : > { %962 = vsyncadd (!%p870_p2), %s709_s11, 4294965248  ;;  %p13_p3 = scmp.ge.s32.totalorder %s1027_s18, 6   ;;  %s1174_s12 = smov %s969_s13 }
 0x1eb   : > { %s1175_s13 = smov %s973_s14  ;;  %s1176_s14 = smov %s1038_s21 }
 0x1ec   : > { %s1177_s15 = smov %s1027_s18  ;;  %15 = sbr.rel (!%p13_p3) target bundleno = 3 (0x3), region = 67 }
 0x1f3   :  { %714 = vsyncpa [#allocation3], 1 }
 0x1f4   :  { %716 = vsyncpa [#allocation3 + $0x1], 1 }

</bundles_post_ra>
